<compile_context>
chip_gen: v6e
topology: v6e:2x2x1
jax: 0.10.0
libtpu: 0.0.40
codegen_flags: <defaults>
</compile_context>

<pallas_src>
import jax
import jax.numpy as jnp
from jax.experimental import pallas as pl
from jax.experimental.pallas import tpu as pltpu

_LANE = 128


def _fuse_kernel(x_ref, s_ref, w1_ref, w2_ref, shift_ref, alpha_ref, o_ref):
    # x_ref, s_ref : (Nb, Cin, thw)  VMEM, input dtype, hw on lanes
    # w1_ref/w2_ref: (Cout, Cin)     VMEM f32, conv-weight halves w/ BN scale folded
    # shift_ref    : (Cout, 1)       VMEM f32, beta - mean*scale
    # alpha_ref    : (Cout, 1)       VMEM f32, PReLU slope (per-channel or broadcast)
    # o_ref        : (Nb, Cout, thw) VMEM, input dtype
    w1 = w1_ref[...]
    w2 = w2_ref[...]
    shift = shift_ref[...]
    alpha = alpha_ref[...]
    for n in range(x_ref.shape[0]):          # small static unroll over batch block
        x = x_ref[n].astype(jnp.float32)
        s = s_ref[n].astype(jnp.float32)
        y = jnp.dot(w1, x, preferred_element_type=jnp.float32)
        y = y + jnp.dot(w2, s, preferred_element_type=jnp.float32)
        y = y + shift
        o_ref[n] = jnp.where(y > 0.0, y, alpha * y).astype(o_ref.dtype)


def _vmem_limit_bytes():
    # Generation-aware scoped-VMEM request: half of physical, capped at 64 MiB.
    try:
        phys = int(pltpu.get_tpu_info().vmem_capacity_bytes)
    except Exception:
        phys = 64 << 20
    return min(max(phys // 2, 16 << 20), 64 << 20)


def cross_stage_block(x, shortcut, weight, gamma, beta, run_mean, run_var,
                      prelu_alpha, *, eps=1e-5, max_tile_hw=8192):
    """Fused Conv2d(1x1, bias=False) + BatchNorm2d(eval) + PReLU.

    x, shortcut : (N, Cin, H, W), same dtype (f32 or bf16).
    weight      : (Cout, 2*Cin)  -- 1x1 conv kernel over the channel-concat input.
    prelu_alpha : scalar (shared) or (Cout,) per-channel slope.
    """
    assert x.shape == shortcut.shape and x.dtype == shortcut.dtype
    N, Cin, H, W = x.shape
    Cout = weight.shape[0]
    hw = H * W
    in_bytes = jnp.dtype(x.dtype).itemsize
    out_dtype = x.dtype
    out_bytes = jnp.dtype(out_dtype).itemsize

    # ---- tile sizing: VMEM-budget aware, pad overshoot bounded to <128 lanes ----
    vmem_limit = _vmem_limit_bytes()
    tile_budget = int(vmem_limit * 0.55)
    per_lane_bytes = 2 * (2 * Cin * in_bytes + Cout * out_bytes)   # double-buffered
    max_thw_vmem = max(_LANE, (tile_budget // max(per_lane_bytes, 1)) // _LANE * _LANE)
    max_tile = max(_LANE, min(max_tile_hw, max_thw_vmem))

    ntiles = pl.cdiv(hw, max_tile)
    thw = pl.cdiv(pl.cdiv(hw, ntiles), _LANE) * _LANE
    ntiles = pl.cdiv(hw, thw)

    # Expose >=2 parallel grid steps for v7x megacore when one step covers all work.
    if N * ntiles < 2 and thw > _LANE:
        thw = pl.cdiv(pl.cdiv(hw, 2), _LANE) * _LANE
        ntiles = pl.cdiv(hw, thw)

    # ---- batch blocking: amortize per-grid-step overhead on small-hw layers ----
    per_n_step_bytes = thw * (2 * Cin * in_bytes + Cout * out_bytes)
    nb = 1
    if N > 1:
        nb = max(1, min(N, (1 << 20) // max(per_n_step_bytes, 1)))
        if ntiles == 1:                              # keep >= 2 grid steps
            nb = min(nb, max(1, pl.cdiv(N, 2)))
        nb = min(nb, max(1, tile_budget // max(2 * per_n_step_bytes, 1)))
        nb = min(nb, 8)                              # bound in-kernel unroll
    nbatch = pl.cdiv(N, nb)

    # ---- fold BatchNorm (eval, running stats) into weight / per-channel shift ----
    scale = (gamma.astype(jnp.float32)
             / jnp.sqrt(run_var.astype(jnp.float32) + eps))               # (Cout,)
    w_scaled = weight.astype(jnp.float32) * scale[:, None]                # (Cout, 2*Cin)
    w1 = w_scaled[:, :Cin]
    w2 = w_scaled[:, Cin:]
    shift = (beta.astype(jnp.float32)
             - run_mean.astype(jnp.float32) * scale).reshape(Cout, 1)
    alpha = jnp.asarray(prelu_alpha, jnp.float32).reshape(-1)
    if alpha.shape[0] == 1:
        alpha = jnp.broadcast_to(alpha, (Cout,))
    alpha = alpha.reshape(Cout, 1)

    # Streamed tensors keep their dtype; no padding / slicing HBM passes.
    xr = x.reshape(N, Cin, hw)
    sr = shortcut.reshape(N, Cin, hw)

    flops = 2 * N * hw * (2 * Cin) * Cout + 3 * N * hw * Cout
    bytes_accessed = (N * hw * (2 * Cin * in_bytes + Cout * out_bytes)
                      + (2 * Cin * Cout + 2 * Cout) * 4)

    out = pl.pallas_call(
        _fuse_kernel,
        out_shape=jax.ShapeDtypeStruct((N, Cout, hw), out_dtype),
        grid_spec=pltpu.PrefetchScalarGridSpec(
            num_scalar_prefetch=0,
            grid=(nbatch, ntiles),
            in_specs=[
                pl.BlockSpec((nb, Cin, thw), lambda n, j: (n, 0, j)),
                pl.BlockSpec((nb, Cin, thw), lambda n, j: (n, 0, j)),
                pl.BlockSpec((Cout, Cin), lambda n, j: (0, 0)),
                pl.BlockSpec((Cout, Cin), lambda n, j: (0, 0)),
                pl.BlockSpec((Cout, 1), lambda n, j: (0, 0)),
                pl.BlockSpec((Cout, 1), lambda n, j: (0, 0)),
            ],
            out_specs=pl.BlockSpec((nb, Cout, thw), lambda n, j: (n, 0, j)),
        ),
        compiler_params=pltpu.CompilerParams(
            dimension_semantics=("parallel", "parallel"),
            vmem_limit_bytes=int(vmem_limit)),
        cost_estimate=pl.CostEstimate(flops=int(flops), transcendentals=0,
                                      bytes_accessed=int(bytes_accessed)),
    )(xr, sr, w1, w2, shift, alpha)

    return out.reshape(N, Cout, H, W)


def _reference(x, shortcut, weight, gamma, beta, run_mean, run_var,
               prelu_alpha, eps=1e-5):
    xc = jnp.concatenate([x, shortcut], axis=1).astype(jnp.float32)
    y = jnp.einsum('nchw,oc->nohw', xc, weight.astype(jnp.float32))
    sc = gamma / jnp.sqrt(run_var + eps)
    sh = beta - run_mean * sc
    y = y * sc[None, :, None, None] + sh[None, :, None, None]
    alpha = jnp.asarray(prelu_alpha, jnp.float32).reshape(-1)
    if alpha.shape[0] == 1:
        alpha = jnp.broadcast_to(alpha, (y.shape[1],))
    return jnp.where(y > 0, y, alpha[None, :, None, None] * y)


if __name__ == "__main__":
    key = jax.random.PRNGKey(0)

    def make_case(k, N, Cin, Cout, H, W, dtype, per_channel_alpha):
        ks = jax.random.split(k, 8)
        x = jax.random.normal(ks[0], (N, Cin, H, W), jnp.float32).astype(dtype)
        sc = jax.random.normal(ks[1], (N, Cin, H, W), jnp.float32).astype(dtype)
        w = 0.1 * jax.random.normal(ks[2], (Cout, 2 * Cin), jnp.float32)
        gamma = 1.0 + 0.1 * jax.random.normal(ks[3], (Cout,), jnp.float32)
        beta = 0.1 * jax.random.normal(ks[4], (Cout,), jnp.float32)
        mean = 0.05 * jax.random.normal(ks[5], (Cout,), jnp.float32)
        var = 1.0 + 0.1 * jax.random.uniform(ks[6], (Cout,), jnp.float32)
        if per_channel_alpha:
            alpha = 0.25 + 0.05 * jax.random.normal(ks[7], (Cout,), jnp.float32)
        else:
            alpha = 0.25  # PyTorch PReLU default
        return x, sc, w, gamma, beta, mean, var, alpha

    cases = [
        # (N, Cin, Cout, H,  W,  dtype,        per_chan_alpha, max_tile_hw, tol)
        (2, 4, 8, 16, 16, jnp.float32, False, 8192, 1e-4),   # baseline
        (1, 3, 5, 20, 20, jnp.float32, True,   256, 1e-4),   # multi-tile + ragged hw
        (3, 4, 8,  9, 15, jnp.bfloat16, False, 8192, 5e-2),  # bf16 I/O, ragged, batch block
    ]

    for idx, (N, Cin, Cout, H, W, dtype, pc, mt, tol) in enumerate(cases):
        key, sub = jax.random.split(key)
        args = make_case(sub, N, Cin, Cout, H, W, dtype, pc)
        out = cross_stage_block(*args, max_tile_hw=mt)
        out = jax.block_until_ready(out)
        ref = _reference(*args)
        assert out.shape == (N, Cout, H, W), f"case {idx}: bad shape {out.shape}"
        err = float(jnp.max(jnp.abs(out.astype(jnp.float32) - ref)))
        assert err < tol, f"case {idx}: max abs err {err} >= {tol}"

    print("KERNEL_OK")
</pallas_src>

<mosaic_0001>
module attributes {stable_mosaic.version = 11 : i64} {
  func.func @_fuse_kernel(%arg0: i32, %arg1: i32, %arg2: memref<1x4x256xf32, #tpu.memory_space<vmem>>, %arg3: memref<1x4x256xf32, #tpu.memory_space<vmem>>, %arg4: memref<8x4xf32, #tpu.memory_space<vmem>>, %arg5: memref<8x4xf32, #tpu.memory_space<vmem>>, %arg6: memref<8x1xf32, #tpu.memory_space<vmem>>, %arg7: memref<8x1xf32, #tpu.memory_space<vmem>>, %arg8: memref<1x8x256xf32, #tpu.memory_space<vmem>>) attributes {dimension_semantics = [#tpu.dimension_semantics<parallel>, #tpu.dimension_semantics<parallel>], iteration_bounds = array<i64: 2, 1>, scalar_prefetch = 0 : i64, scratch_operands = 0 : i64, tpu.core_type = #tpu.core_type<tc>, window_params = [{transform_indices = @transform_0, window_bounds = array<i64: 1, 4, 256>}, {transform_indices = @transform_1, window_bounds = array<i64: 1, 4, 256>}, {pipeline_mode = #tpu.pipeline_mode<synchronous>, transform_indices = @transform_2, window_bounds = array<i64: 8, 4>}, {pipeline_mode = #tpu.pipeline_mode<synchronous>, transform_indices = @transform_3, window_bounds = array<i64: 8, 4>}, {pipeline_mode = #tpu.pipeline_mode<synchronous>, transform_indices = @transform_4, window_bounds = array<i64: 8, 1>}, {pipeline_mode = #tpu.pipeline_mode<synchronous>, transform_indices = @transform_5, window_bounds = array<i64: 8, 1>}, {transform_indices = @transform_6, window_bounds = array<i64: 1, 8, 256>}]} {
    %c0 = arith.constant 0 : index
    %c0_0 = arith.constant 0 : index
    %0 = vector.load %arg4[%c0, %c0_0] : memref<8x4xf32, #tpu.memory_space<vmem>>, vector<8x4xf32>
    %c0_1 = arith.constant 0 : index
    %c0_2 = arith.constant 0 : index
    %1 = vector.load %arg5[%c0_1, %c0_2] : memref<8x4xf32, #tpu.memory_space<vmem>>, vector<8x4xf32>
    %c0_3 = arith.constant 0 : index
    %c0_4 = arith.constant 0 : index
    %2 = vector.load %arg6[%c0_3, %c0_4] : memref<8x1xf32, #tpu.memory_space<vmem>>, vector<8x1xf32>
    %c0_5 = arith.constant 0 : index
    %c0_6 = arith.constant 0 : index
    %3 = vector.load %arg7[%c0_5, %c0_6] : memref<8x1xf32, #tpu.memory_space<vmem>>, vector<8x1xf32>
    %c0_7 = arith.constant 0 : index
    %c0_8 = arith.constant 0 : index
    %c0_9 = arith.constant 0 : index
    %4 = vector.load %arg2[%c0_7, %c0_8, %c0_9] : memref<1x4x256xf32, #tpu.memory_space<vmem>>, vector<1x4x256xf32>
    %5 = vector.shape_cast %4 : vector<1x4x256xf32> to vector<4x256xf32>
    %c0_10 = arith.constant 0 : index
    %c0_11 = arith.constant 0 : index
    %c0_12 = arith.constant 0 : index
    %6 = vector.load %arg3[%c0_10, %c0_11, %c0_12] : memref<1x4x256xf32, #tpu.memory_space<vmem>>, vector<1x4x256xf32>
    %7 = vector.shape_cast %6 : vector<1x4x256xf32> to vector<4x256xf32>
    %cst = arith.constant dense<0.000000e+00> : vector<8x256xf32>
    %8 = tpu.matmul %0, %5, %cst {dimension_numbers = #tpu.dot_dimension_numbers<[1], [0], [0], [1], [0, 0, 1, 1], [], []>} : vector<8x4xf32>, vector<4x256xf32>, vector<8x256xf32> -> vector<8x256xf32>
    %cst_13 = arith.constant dense<0.000000e+00> : vector<8x256xf32>
    %9 = tpu.matmul %1, %7, %cst_13 {dimension_numbers = #tpu.dot_dimension_numbers<[1], [0], [0], [1], [0, 0, 1, 1], [], []>} : vector<8x4xf32>, vector<4x256xf32>, vector<8x256xf32> -> vector<8x256xf32>
    %10 = arith.addf %8, %9 : vector<8x256xf32>
    %11 = vector.broadcast %2 : vector<8x1xf32> to vector<8x256xf32>
    %12 = arith.addf %10, %11 : vector<8x256xf32>
    %cst_14 = arith.constant 0.000000e+00 : f32
    %13 = vector.broadcast %cst_14 : f32 to vector<8x256xf32>
    %14 = arith.cmpf ogt, %12, %13 : vector<8x256xf32>
    %15 = vector.broadcast %3 : vector<8x1xf32> to vector<8x256xf32>
    %16 = arith.mulf %15, %12 : vector<8x256xf32>
    %17 = arith.select %14, %12, %16 : vector<8x256xi1>, vector<8x256xf32>
    %c0_15 = arith.constant 0 : index
    %c0_16 = arith.constant 0 : index
    %c0_17 = arith.constant 0 : index
    %18 = vector.load %arg8[%c0_15, %c0_16, %c0_17] : memref<1x8x256xf32, #tpu.memory_space<vmem>>, vector<1x8x256xf32>
    %19 = vector.shape_cast %18 : vector<1x8x256xf32> to vector<8x256xf32>
    %20 = vector.shape_cast %17 : vector<8x256xf32> to vector<1x8x256xf32>
    tpu.vector_store %arg8[%c0_15, %c0_16, %c0_17], %20 {strides = array<i32>} : memref<1x8x256xf32, #tpu.memory_space<vmem>>, vector<1x8x256xf32>,
    return
  }
  func.func @transform_0(%arg0: i32, %arg1: i32) -> (i32, i32, i32) {
    %c0_i32 = arith.constant 0 : i32
    %c0_i32_0 = arith.constant 0 : i32
    return %arg0, %c0_i32, %arg1 : i32, i32, i32
  }
  func.func @transform_1(%arg0: i32, %arg1: i32) -> (i32, i32, i32) {
    %c0_i32 = arith.constant 0 : i32
    %c0_i32_0 = arith.constant 0 : i32
    return %arg0, %c0_i32, %arg1 : i32, i32, i32
  }
  func.func @transform_2(%arg0: i32, %arg1: i32) -> (i32, i32) {
    %c0_i32 = arith.constant 0 : i32
    %c0_i32_0 = arith.constant 0 : i32
    %c0_i32_1 = arith.constant 0 : i32
    return %c0_i32, %c0_i32_0 : i32, i32
  }
  func.func @transform_3(%arg0: i32, %arg1: i32) -> (i32, i32) {
    %c0_i32 = arith.constant 0 : i32
    %c0_i32_0 = arith.constant 0 : i32
    %c0_i32_1 = arith.constant 0 : i32
    return %c0_i32, %c0_i32_0 : i32, i32
  }
  func.func @transform_4(%arg0: i32, %arg1: i32) -> (i32, i32) {
    %c0_i32 = arith.constant 0 : i32
    %c0_i32_0 = arith.constant 0 : i32
    %c0_i32_1 = arith.constant 0 : i32
    return %c0_i32, %c0_i32_0 : i32, i32
  }
  func.func @transform_5(%arg0: i32, %arg1: i32) -> (i32, i32) {
    %c0_i32 = arith.constant 0 : i32
    %c0_i32_0 = arith.constant 0 : i32
    %c0_i32_1 = arith.constant 0 : i32
    return %c0_i32, %c0_i32_0 : i32, i32
  }
  func.func @transform_6(%arg0: i32, %arg1: i32) -> (i32, i32, i32) {
    %c0_i32 = arith.constant 0 : i32
    %c0_i32_0 = arith.constant 0 : i32
    return %arg0, %c0_i32, %arg1 : i32, i32, i32
  }
}

</mosaic_0001>

<bundles_post_ra>
// kernel: tpu_custom_call.1
= control target key start
LH: loop header
LB: loop body
LE: loop exit
PB: predicated region body
PF: predicated region fallthrough
CT: control target
= control target key end

     0   :  { %11 = vsyncpa [#allocation3], 0  ;;  %s936_s0 = inlined_call_operand.vmem [shape: f32[2,4,256], index: 0, kind: input, shape index: {}]   ;;  %s937_s1 = inlined_call_operand.vmem [shape: f32[2,4,256], index: 1, kind: input, shape index: {}]   ;;  %s938_s2 = inlined_call_operand.vmem [shape: f32[8,4], index: 2, kind: input, shape index: {}]   ;;  %s939_s3 = inlined_call_operand.vmem [shape: f32[8,4], index: 3, kind: input, shape index: {}]   ;;  %s940_s4 = inlined_call_operand.vmem [shape: f32[8,1], index: 4, kind: input, shape index: {}]   ;;  %s941_s5 = inlined_call_operand.vmem [shape: f32[8,1], index: 5, kind: input, shape index: {}]   ;;  %s942_s6 = inlined_call_operand.hbm [shape: f32[2,8,256], index: 6, kind: output, shape index: {}]  }
   0x1   :  { %13 = vsyncpa [#allocation3 + $0x1], 0  ;;  %s816_s21 = smov 0   ;;  %s818_s22 = smov 0  }
   0x2   :  { %s820_s23 = smov 0   ;;  %s822_s24 = smov 0  }
   0x3   :  { %s824_s25 = smov 0   ;;  %s826_s26 = smov 0  }
   0x4 LB: > { %s616_s27 = sadd.s32 4294967295, %s776_s26   ;;  %s617_s28 = sadd.s32 4294967294, %s776_s26   ;;  %s776_s26 = sphi %s826_s26, %s19_s26   ;;  %s772_s25 = sphi %s824_s25, %s949_s25   ;;  %s768_s24 = sphi %s822_s24, %s948_s24   ;;  %s764_s23 = sphi %s820_s23, %s947_s23   ;;  %s760_s22 = sphi %s818_s22, %s946_s22   ;;  %s756_s21 = sphi %s816_s21, %s945_s21  }
   0x5   : > { %s31_s29 = sadd.s32 1, %s772_s25  ;;  %s180_s30 = sadd.s32 1, %s764_s23 }
   0x6   : > { %p33_p0 = scmp.ge.s32.totalorder %s31_s29, 2  ;;  %p190_p1 = scmp.ne.s32.totalorder %s764_s23, %s760_s22 }
   0x7   : > { %p191_p2 = scmp.eq.s32.totalorder %s616_s27, 1  ;;  %p196_p3 = scmp.ne.s32.totalorder %s760_s22, %s756_s21 }
   0x8   : > { %s951_s29 = smov (%p33_p0, %s31_s29), 0  ;;  %p197_p5 = scmp.eq.s32.totalorder %s617_s28, 1 }
   0x9   : > { %p856_p4 = por %p191_p2, %p190_p1  ;;  %s175_s8 = ssub.s32 %s772_s25, %s951_s29 }
   0xa   : > { %p620_p6 = scmp.ge.s32.totalorder %s776_s26, 1  ;;  %p178_p7 = scmp.eq.s32.totalorder %s175_s8, 0 }
   0xb   : > { %p863_p8 = por %p197_p5, %p196_p3  ;;  %p253_p9 = scmp.lt.s32.totalorder %s776_s26, 3 }
   0xc   : > { %s869_s10 = scalar_select %p178_p7, %s764_s23, %s180_s30  }
   0xd   : > { %p254_p10 = pnand %p620_p6, %p253_p9 }
   0xe   : > { %p297_p11 = scmp.lt.s32.totalorder (!%p254_p10), %s768_s24, 1  ;;  %s639_s15 = sshll.u32 (!%p254_p10), %s768_s24, 8 }
   0xf   : > { %257 = sbr.rel (%p254_p10) target bundleno = 245 (0xf5), region = 44  ;;  %s896_s20 = scalar_lea.hbm (!%p254_p10), %s942_s6, %s639_s15 }
  0x14   : > { %v778_v0 = vmov 0.0   ;;  %v319_v1 = vld [vmem:[%s940_s4] sm:$0xff]  ;;  %s298_s13 = scalar_select %p297_p11, %s768_s24, 1  ;;  %v779_v2 = vmov 0   ;;  %vm329_vm0 = vcmask 1043456   ;;  %vm325_vm1 = vcmask 31744  }
  0x15   : > { %398 = vmatprep.mubr.f32.mxu0 %v778_v0  ;;  %478 = vmatprep.mubr.f32.mxu1 %v778_v0  ;;  %v320_v3 = vld [vmem:[%s941_s5] sm:$0xff]  ;;  %s780_s24 = smov [#allocation2]  }
  0x16   : > { %697 = vset.pattern.permute.xlu0 %v779_v2  ;;  %s637_s14 = sshll.u32 %s298_s13, 3  ;;  %v318_v8 = vld [vmem:[%s939_s3] sm:$0xff]  ;;  %s293_s13 = sand.u32 1, %s760_s22  }
  0x17   : > { %487 = vperm.xlu0 %697, %v319_v1   ;;  %s314_s19 = scalar_lea.vmem %s937_s1, %s637_s14  ;;  %s304_s28 = scalar_lea.vmem %s936_s0, %s637_s14  ;;  %v317_v9 = vld [vmem:[%s938_s2] sm:$0xff] }
  0x18   : > { %v322_v4 = vld [vmem:[%s314_s19] sm:$0xff]  ;;  %s621_s14 = sshll.u32 %s293_s13, 4  ;;  %s506_s27 = scalar_lea.sflag [#allocation3], %s293_s13 }
  0x19   : > { %v321_v5 = vld [vmem:[%s304_s28] sm:$0xff]  ;;  %v324_v6 = vcombine.high %v322_v4, %v322_v4  ;;  %s295_s16 = scalar_lea.vmem [#allocation2], %s621_s14  ;;  %s704_s30 = sshll.u32 %s780_s24, 4  ;;  %s705_s30 = int_to_ptr.vmem [resolvable:$false] %s704_s30 }
  0x1a   : > { %v406_v7 = vcombine.high %v321_v5, %v321_v5  ;;  %s522_s17 = sshll.u32 %s295_s16, 4  ;;  %s706_s8 = scalar_lea.vmem %s705_s30, 512  ;;  %s523_s17 = int_to_ptr.vmem [resolvable:$true] %s522_s17 }
  0x1b   : > { %496 = vperm.xlu0 %697, %v320_v3   ;;  %626 = vmatprep.subr.msk.mxu0 %vm329_vm0, %v324_v6  ;;  %s700_s28 = scalar_lea.vmem %s523_s17, 256  ;;  %p707_p1 = scmp.lt.s32.totalorder %s523_s17, %s705_s30 }
  0x1c   : > { %629 = vmatprep.subr.msk.mxu1 %vm329_vm0, %v406_v7  ;;  %627 = vmatpush1.msk.msra.mxu0 %vm329_vm0, %v322_v4  ;;  %p701_p12 = scmp.ne.s32.totalorder %s523_s17, %s700_s28  ;;  %p708_p2 = scmp.lt.s32.totalorder %s706_s8, %s700_s28 }
  0x1d   : > { %630 = vmatpush1.msk.msra.mxu1 %vm329_vm0, %v321_v5  ;;  %628 = vmatmul.mubr.msk.f32.vlgmr.msra.gmra.mxu0 %vm325_vm1, %v318_v8 }
  0x1e   : > { %631 = vmatmul.mubr.msk.f32.vlgmr.msra.gmra.mxu1 %vm325_vm1, %v317_v9  ;;  %p702_p13 = pnand %p701_p12, %p856_p4  ;;  %p709_p3 = por %p708_p2, %p707_p1 }
  0x20   : > { %p703_p0 = pneg %p702_p13 }
  0x22   : > { %p710_p5 = pnand %p709_p3, %p703_p0 }
  0x92   : > { %v488_v10 = vpop.permute.xlu0 %487 }
  0x96   : > { %v497_v18 = vpop.permute.xlu0 %496 }
  0xdd   : > { %v400_v11 = vpop.f32.mrf.mxu0 }
  0xde   : > { %v480_v12 = vpop.f32.mrf.mxu1 }
  0xdf   : > { %v481_v13 = vadd.f32 %v480_v12, %v400_v11  ;;  %v402_v14 = vpop.f32.mrf.mxu0 }
  0xe0   : > { %v482_v15 = vpop.f32.mrf.mxu1 }
  0xe1   : > { %v490_v16 = vadd.f32 %v488_v10, %v481_v13  ;;  %v483_v17 = vadd.f32 %v482_v15, %v402_v14 }
  0xe3   : > { %vm492_vm2 = vcmp.gt.f32.partialorder %v490_v16, 0.0  ;;  %v499_v19 = vmul.f32 %v497_v18, %v490_v16  ;;  %v491_v20 = vadd.f32 %v488_v10, %v483_v17 }
  0xe5   : > { %v501_v21 = vsel %vm492_vm2, %v490_v16, %v499_v19  ;;  %vm493_vm3 = vcmp.gt.f32.partialorder %v491_v20, 0.0  ;;  %v500_v22 = vmul.f32 %v497_v18, %v491_v20 }
  0xe6   : > { %503 = vst [vmem:[%s295_s16] sm:$0xff] %v501_v21 }
  0xe7   : > { %v502_v23 = vsel %vm493_vm3, %v491_v20, %v500_v22 }
  0xe8   : > { %504 = vst [vmem:[%s295_s16 + $0x8] sm:$0xff] %v502_v23 }
  0xe9   : > { %713 = shalt.err (!%p710_p5)
}
  0xea   : > { %s714_s11 = scalar_lea.hbm %s896_s20, 256  ;;  %s718_s14 = scalar_lea.hbm %s942_s6, 512 }
  0xeb   : > { %p715_p6 = scmp.ne.s32.totalorder %s896_s20, %s714_s11  ;;  %p719_p10 = scmp.lt.s32.totalorder %s896_s20, %s942_s6 }
  0xec   : > { %p720_p11 = scmp.lt.s32.totalorder %s718_s14, %s714_s11 }
  0xed   : > { %p716_p7 = pnand %p715_p6, %p856_p4 }
  0xee   : > { %p721_p12 = por %p720_p11, %p719_p10 }
  0xef   : > { %p717_p9 = pneg %p716_p7 }
  0xf1   : > { %p722_p13 = pnand %p721_p12, %p717_p9 }
  0xf3   : > { %725 = shalt.err (!%p722_p13)
}
  0xf4   : > { %640 = dma.vmem_to_hbm [thread:$0]  (%p856_p4), %s523_s17, 256, %s896_s20, %s506_s27  }
  0xf5 PF: > { %p646_p0 = scmp.ge.s32.totalorder %s776_s26, 2  ;;  %s534_s18 = sand.u32 1, %s756_s21  }
  0xf6   : > { %s535_s19 = scalar_lea.sflag [#allocation3], %s534_s18 }
  0xf7   : > { %p643_p1 = pnand %p646_p0, %p863_p8 }
  0xf9   : > { %p644_p2 = pneg %p643_p1 }
  0xfb   : > { %751 = dma.done.wait (%p644_p2), %s535_s19, 256  }
  0xfc   : > { %753 = vsyncadd (%p644_p2), %s535_s19, 4294967040  ;;  %s19_s26 = sadd.s32 1, %s776_s26   ;;  %s945_s21 = smov %s760_s22 }
  0xfd   : > { %p16_p3 = scmp.ge.s32.totalorder %s19_s26, 4   ;;  %s946_s22 = smov %s764_s23 }
  0xfe   : > { %s947_s23 = smov %s869_s10  ;;  %s948_s24 = smov %s772_s25 }
  0xff   : > { %s949_s25 = smov %s951_s29  ;;  %18 = sbr.rel (!%p16_p3) target bundleno = 4 (0x4), region = 82 }
 0x104   :  { %540 = vsyncpa [#allocation3], 1 }
 0x105   :  { %542 = vsyncpa [#allocation3 + $0x1], 1 }

</bundles_post_ra>
